<compile_context>
chip_gen: v7x
topology: tpu7x:2x2x1
jax: 0.10.0
libtpu: 0.0.40
codegen_flags: <defaults>
</compile_context>

<pallas_src>
import jax
import jax.numpy as jnp
from jax.experimental import pallas as pl
from jax.experimental.pallas import tpu as pltpu


def _round_up(x, m):
    return ((x + m - 1) // m) * m


def _pick_tile(dim, candidates):
    for c in candidates:
        if dim % c == 0:
            return c
    return candidates[-1]


def _make_kernel(tk, x_resident):
    """Kernel over grid (N tiles, K tiles); K last, output resident across K."""

    def kernel(x_ref, w_ref, gamma_ref, beta_ref, o_ref):
        k = pl.program_id(1)
        nk = pl.num_programs(1)

        # Zero the resident f32 output block at the start of the K reduction.
        @pl.when(k == 0)
        def _():
            o_ref[...] = jnp.zeros_like(o_ref)

        if x_resident:
            # x block holds the full (B, K_pad) activation; slice the current
            # K chunk (lane-aligned, tk is a multiple of 128).
            start = pl.multiple_of(k * tk, 128)
            x_blk = x_ref[:, pl.ds(start, tk)]
        else:
            x_blk = x_ref[...]

        # MXU matmul partial product (bf16 operands, f32 accumulate) directly
        # into the resident output block.
        o_ref[...] += jnp.dot(x_blk, w_ref[...], preferred_element_type=jnp.float32)

        # Epilogue on the last K step: training-mode BatchNorm1d over the full
        # resident batch, fused with LeakyReLU, all in f32, in place.
        @pl.when(k == nk - 1)
        def _():
            y = o_ref[...]                                    # (B, tn) f32
            mean = jnp.mean(y, axis=0, keepdims=True)         # (1, tn)
            d = y - mean
            var = jnp.mean(d * d, axis=0, keepdims=True)      # biased var (PyTorch norm)
            scale = gamma_ref[...] * jax.lax.rsqrt(var + 1e-5)
            shift = beta_ref[...] - mean * scale
            y_bn = y * scale + shift
            # LeakyReLU (negative_slope = 0.01) as a single VALU max.
            o_ref[...] = jnp.maximum(y_bn, 0.01 * y_bn).astype(o_ref.dtype)

    return kernel


def linear_mlp(x, weight, bias, gamma, beta, *,
               compute_dtype=jnp.bfloat16, tn=None, tk=None, x_resident=None):
    """x: (B, in_dim); weight: (out_dim, in_dim); bias/gamma/beta: (out_dim,).

    `bias` is accepted for interface fidelity with nn.Linear but NOT used: it
    cancels exactly under training-mode BatchNorm (batch-mean subtraction).
    Exact BN stats require the full batch resident per N tile (B is not tiled).
    """
    del bias  # mathematically cancelled by the BN mean subtraction

    B, in_dim = x.shape
    out_dim = weight.shape[0]

    # Pad feature dims to lane-dense multiples of 128 (exact: zero padding).
    K_p = _round_up(in_dim, 128)
    N_p = _round_up(out_dim, 128)

    if tk is None:
        tk = _pick_tile(K_p, (512, 384, 256, 128))
    if tn is None:
        # 256-wide tiles (v6e/v7x 256x256 MXU) only if the N axis keeps >= 2
        # tiles, so v7x's second TensorCore still gets work.
        tn = 256 if (N_p % 256 == 0 and N_p >= 512) else 128

    x_c = x.astype(compute_dtype)
    w_t = weight.T.astype(compute_dtype)          # (in_dim, out_dim)

    if K_p != in_dim or N_p != out_dim:
        x_c = jnp.pad(x_c, ((0, 0), (0, K_p - in_dim)))
        w_t = jnp.pad(w_t, ((0, K_p - in_dim), (0, N_p - out_dim)))
        gamma_p = jnp.pad(gamma, (0, N_p - out_dim), constant_values=1.0)
        beta_p = jnp.pad(beta, (0, N_p - out_dim))
    else:
        gamma_p, beta_p = gamma, beta

    g2 = gamma_p.reshape(1, N_p).astype(jnp.float32)
    be2 = beta_p.reshape(1, N_p).astype(jnp.float32)

    x_bytes = jnp.dtype(compute_dtype).itemsize
    if x_resident is None:
        # Keep x fully resident (single DMA, no per-N-tile re-streaming) when small.
        x_resident = B * K_p * x_bytes <= (8 << 20)

    grid = (N_p // tn, K_p // tk)                 # (N, K); reduction axis last

    if x_resident:
        x_spec = pl.BlockSpec((B, K_p), lambda n, k: (0, 0))
        x_buf_bytes = 2 * B * K_p * x_bytes
    else:
        x_spec = pl.BlockSpec((B, tk), lambda n, k: (0, k))
        x_buf_bytes = 2 * B * tk * x_bytes

    needed = (x_buf_bytes
              + 2 * tk * tn * x_bytes             # double-buffered W tile
              + 2 * B * tn * 4                    # resident f32 output block
              + 2 * 2 * 8 * tn * 4)               # gamma/beta (sublane-padded)
    vmem_limit = int(min(max(2 * needed, 32 << 20), 64 << 20))

    out_p = pl.pallas_call(
        _make_kernel(tk, x_resident),
        out_shape=jax.ShapeDtypeStruct((B, N_p), jnp.float32),
        grid_spec=pltpu.PrefetchScalarGridSpec(
            num_scalar_prefetch=0,
            grid=grid,
            in_specs=[
                x_spec,                                          # x
                pl.BlockSpec((tk, tn), lambda n, k: (k, n)),     # W^T tile
                pl.BlockSpec((1, tn), lambda n, k: (0, n)),      # gamma
                pl.BlockSpec((1, tn), lambda n, k: (0, n)),      # beta
            ],
            out_specs=pl.BlockSpec((B, tn), lambda n, k: (0, n)),
        ),
        compiler_params=pltpu.CompilerParams(
            dimension_semantics=("parallel", "arbitrary"),
            vmem_limit_bytes=vmem_limit,
        ),
    )(x_c, w_t, g2, be2)

    return out_p[:, :out_dim] if N_p != out_dim else out_p


def linear_mlp_ref(x, weight, bias, gamma, beta, compute_dtype=jnp.float32):
    # Faithful PyTorch forward (bias included) — verifies the bias cancellation.
    y = jnp.dot(x.astype(compute_dtype), weight.T.astype(compute_dtype),
                preferred_element_type=jnp.float32) + bias
    mean = jnp.mean(y, axis=0, keepdims=True)
    var = jnp.mean((y - mean) ** 2, axis=0, keepdims=True)
    y_bn = (y - mean) * jax.lax.rsqrt(var + 1e-5) * gamma + beta
    return jnp.where(y_bn > 0, y_bn, 0.01 * y_bn)


if __name__ == "__main__":
    def run_case(key, B, in_dim, out_dim, **kw):
        kx, kw_, kb, kg, kbe = jax.random.split(key, 5)
        x = jax.random.normal(kx, (B, in_dim), dtype=jnp.float32)
        bound = 1.0 / float(in_dim) ** 0.5
        weight = jax.random.uniform(kw_, (out_dim, in_dim), jnp.float32, -bound, bound)
        bias = jax.random.uniform(kb, (out_dim,), jnp.float32, -bound, bound)
        gamma = 1.0 + 0.1 * jax.random.normal(kg, (out_dim,), jnp.float32)
        beta = 0.1 * jax.random.normal(kbe, (out_dim,), jnp.float32)

        out = jax.block_until_ready(linear_mlp(x, weight, bias, gamma, beta, **kw))
        assert out.shape == (B, out_dim)
        # Apples-to-apples: reference with the same bf16 inputs / f32 accumulation.
        ref_bf16 = linear_mlp_ref(x, weight, bias, gamma, beta, jnp.bfloat16)
        assert jnp.allclose(out, ref_bf16, atol=2e-3, rtol=2e-3), "mismatch vs bf16 ref"
        # Loose sanity check against the full-f32 PyTorch-equivalent forward.
        ref_f32 = linear_mlp_ref(x, weight, bias, gamma, beta, jnp.float32)
        assert jnp.allclose(out, ref_f32, atol=5e-2, rtol=5e-2), "mismatch vs f32 ref"

    key = jax.random.PRNGKey(0)
    keys = jax.random.split(key, 4)
    # Resident x, single-K grid (2 N tiles).
    run_case(keys[0], 8, 384, 256)
    # Resident x with multi-K reduction (exercises in-kernel dynamic K slice).
    run_case(keys[1], 8, 384, 256, tk=128)
    # Streamed (tiled) x path.
    run_case(keys[2], 8, 384, 256, tk=128, x_resident=False)
    # Non-128-multiple dims -> zero-padding path.
    run_case(keys[3], 6, 100, 72)

    print("KERNEL_OK")
</pallas_src>

<mosaic_0001>
module attributes {stable_mosaic.version = 11 : i64} {
  func.func @kernel(%arg0: i32, %arg1: i32, %arg2: memref<8x384xbf16, #tpu.memory_space<vmem>>, %arg3: memref<384x128xbf16, #tpu.memory_space<vmem>>, %arg4: memref<1x128xf32, #tpu.memory_space<vmem>>, %arg5: memref<1x128xf32, #tpu.memory_space<vmem>>, %arg6: memref<8x128xf32, #tpu.memory_space<vmem>>) attributes {dimension_semantics = [#tpu.dimension_semantics<parallel>, #tpu.dimension_semantics<arbitrary>], iteration_bounds = array<i64: 2, 1>, scalar_prefetch = 0 : i64, scratch_operands = 0 : i64, tpu.core_type = #tpu.core_type<tc>, window_params = [{pipeline_mode = #tpu.pipeline_mode<synchronous>, transform_indices = @transform_0, window_bounds = array<i64: 8, 384>}, {transform_indices = @transform_1, window_bounds = array<i64: 384, 128>}, {transform_indices = @transform_2, window_bounds = array<i64: 1, 128>}, {transform_indices = @transform_3, window_bounds = array<i64: 1, 128>}, {transform_indices = @transform_4, window_bounds = array<i64: 8, 128>}]} {
    %c0_i32 = arith.constant 0 : i32
    %0 = arith.cmpi eq, %arg1, %c0_i32 : i32
    %1 = arith.extui %0 : i1 to i32
    %c0_i32_0 = arith.constant 0 : i32
    %2 = arith.cmpi ne, %1, %c0_i32_0 : i32
    scf.if %2 {
      %cst_9 = arith.constant 0.000000e+00 : f32
      %15 = vector.broadcast %cst_9 : f32 to vector<8x128xf32>
      %c0_10 = arith.constant 0 : index
      %c0_11 = arith.constant 0 : index
      %16 = vector.load %arg6[%c0_10, %c0_11] : memref<8x128xf32, #tpu.memory_space<vmem>>, vector<8x128xf32>
      tpu.vector_store %arg6[%c0_10, %c0_11], %15 {strides = array<i32>} : memref<8x128xf32, #tpu.memory_space<vmem>>, vector<8x128xf32>,
    } else {
    }
    %c384_i32 = arith.constant 384 : i32
    %3 = arith.muli %arg1, %c384_i32 : i32
    %4 = tpu.assume_multiple %3, 128 : i32
    %c0 = arith.constant 0 : index
    %5 = arith.index_cast %4 : i32 to index
    %6 = vector.load %arg2[%c0, %5] : memref<8x384xbf16, #tpu.memory_space<vmem>>, vector<8x384xbf16>
    %c0_1 = arith.constant 0 : index
    %c0_2 = arith.constant 0 : index
    %7 = vector.load %arg6[%c0_1, %c0_2] : memref<8x128xf32, #tpu.memory_space<vmem>>, vector<8x128xf32>
    %c0_3 = arith.constant 0 : index
    %c0_4 = arith.constant 0 : index
    %8 = vector.load %arg3[%c0_3, %c0_4] : memref<384x128xbf16, #tpu.memory_space<vmem>>, vector<384x128xbf16>
    %cst = arith.constant dense<0.000000e+00> : vector<8x128xf32>
    %9 = tpu.matmul %6, %8, %cst {dimension_numbers = #tpu.dot_dimension_numbers<[1], [0], [0], [1], [0, 0, 1, 1], [], []>} : vector<8x384xbf16>, vector<384x128xbf16>, vector<8x128xf32> -> vector<8x128xf32>
    %10 = arith.addf %7, %9 : vector<8x128xf32>
    %c0_5 = arith.constant 0 : index
    %c0_6 = arith.constant 0 : index
    %11 = vector.load %arg6[%c0_5, %c0_6] : memref<8x128xf32, #tpu.memory_space<vmem>>, vector<8x128xf32>
    tpu.vector_store %arg6[%c0_5, %c0_6], %10 {strides = array<i32>} : memref<8x128xf32, #tpu.memory_space<vmem>>, vector<8x128xf32>,
    %c0_i32_7 = arith.constant 0 : i32
    %12 = arith.cmpi eq, %arg1, %c0_i32_7 : i32
    %13 = arith.extui %12 : i1 to i32
    %c0_i32_8 = arith.constant 0 : i32
    %14 = arith.cmpi ne, %13, %c0_i32_8 : i32
    scf.if %14 {
      %c0_9 = arith.constant 0 : index
      %c0_10 = arith.constant 0 : index
      %15 = vector.load %arg6[%c0_9, %c0_10] : memref<8x128xf32, #tpu.memory_space<vmem>>, vector<8x128xf32>
      %cst_11 = arith.constant dense<0.000000e+00> : vector<128xf32>
      %16 = vector.multi_reduction <add>, %15, %cst_11 [0] : vector<8x128xf32> to vector<128xf32>
      %17 = vector.shape_cast %16 : vector<128xf32> to vector<1x128xf32>
      %cst_12 = arith.constant 8.000000e+00 : f32
      %18 = vector.broadcast %cst_12 : f32 to vector<1x128xf32>
      %19 = arith.divf %17, %18 : vector<1x128xf32>
      %20 = vector.broadcast %19 : vector<1x128xf32> to vector<8x128xf32>
      %21 = arith.subf %15, %20 : vector<8x128xf32>
      %22 = arith.mulf %21, %21 : vector<8x128xf32>
      %cst_13 = arith.constant dense<0.000000e+00> : vector<128xf32>
      %23 = vector.multi_reduction <add>, %22, %cst_13 [0] : vector<8x128xf32> to vector<128xf32>
      %24 = vector.shape_cast %23 : vector<128xf32> to vector<1x128xf32>
      %cst_14 = arith.constant 8.000000e+00 : f32
      %25 = vector.broadcast %cst_14 : f32 to vector<1x128xf32>
      %26 = arith.divf %24, %25 : vector<1x128xf32>
      %c0_15 = arith.constant 0 : index
      %c0_16 = arith.constant 0 : index
      %27 = vector.load %arg4[%c0_15, %c0_16] : memref<1x128xf32, #tpu.memory_space<vmem>>, vector<1x128xf32>
      %cst_17 = arith.constant 9.99999974E-6 : f32
      %28 = vector.broadcast %cst_17 : f32 to vector<1x128xf32>
      %29 = arith.addf %26, %28 : vector<1x128xf32>
      %30 = math.rsqrt %29 : vector<1x128xf32>
      %31 = arith.mulf %27, %30 : vector<1x128xf32>
      %c0_18 = arith.constant 0 : index
      %c0_19 = arith.constant 0 : index
      %32 = vector.load %arg5[%c0_18, %c0_19] : memref<1x128xf32, #tpu.memory_space<vmem>>, vector<1x128xf32>
      %33 = arith.mulf %19, %31 : vector<1x128xf32>
      %34 = arith.subf %32, %33 : vector<1x128xf32>
      %35 = vector.broadcast %31 : vector<1x128xf32> to vector<8x128xf32>
      %36 = arith.mulf %15, %35 : vector<8x128xf32>
      %37 = vector.broadcast %34 : vector<1x128xf32> to vector<8x128xf32>
      %38 = arith.addf %36, %37 : vector<8x128xf32>
      %cst_20 = arith.constant 0.00999999977 : f32
      %39 = vector.broadcast %cst_20 : f32 to vector<8x128xf32>
      %40 = arith.mulf %39, %38 : vector<8x128xf32>
      %41 = arith.maximumf %38, %40 : vector<8x128xf32>
      %c0_21 = arith.constant 0 : index
      %c0_22 = arith.constant 0 : index
      %42 = vector.load %arg6[%c0_21, %c0_22] : memref<8x128xf32, #tpu.memory_space<vmem>>, vector<8x128xf32>
      tpu.vector_store %arg6[%c0_21, %c0_22], %41 {strides = array<i32>} : memref<8x128xf32, #tpu.memory_space<vmem>>, vector<8x128xf32>,
    } else {
    }
    return
  }
  func.func @transform_0(%arg0: i32, %arg1: i32) -> (i32, i32) {
    %c0_i32 = arith.constant 0 : i32
    %c0_i32_0 = arith.constant 0 : i32
    %c0_i32_1 = arith.constant 0 : i32
    return %c0_i32, %c0_i32_0 : i32, i32
  }
  func.func @transform_1(%arg0: i32, %arg1: i32) -> (i32, i32) {
    %c0_i32 = arith.constant 0 : i32
    return %arg1, %arg0 : i32, i32
  }
  func.func @transform_2(%arg0: i32, %arg1: i32) -> (i32, i32) {
    %c0_i32 = arith.constant 0 : i32
    %c0_i32_0 = arith.constant 0 : i32
    return %c0_i32, %arg0 : i32, i32
  }
  func.func @transform_3(%arg0: i32, %arg1: i32) -> (i32, i32) {
    %c0_i32 = arith.constant 0 : i32
    %c0_i32_0 = arith.constant 0 : i32
    return %c0_i32, %arg0 : i32, i32
  }
  func.func @transform_4(%arg0: i32, %arg1: i32) -> (i32, i32) {
    %c0_i32 = arith.constant 0 : i32
    %c0_i32_0 = arith.constant 0 : i32
    return %c0_i32, %arg0 : i32, i32
  }
}

</mosaic_0001>

<bundles_post_ra>
// kernel: tpu_custom_call.1
= control target key start
LH: loop header
LB: loop body
LE: loop exit
PB: predicated region body
PF: predicated region fallthrough
CT: control target
= control target key end

     0   :  { %9 = vsyncpa [#allocation3], 0  ;;  %s1377_s0 = inlined_call_operand.hbm [shape: bf16[8,384], index: 0, kind: input, shape index: {}]   ;;  %s1378_s1 = inlined_call_operand.hbm [shape: bf16[384,256], index: 1, kind: input, shape index: {}]   ;;  %s1379_s2 = inlined_call_operand.vmem [shape: f32[1,256], index: 2, kind: input, shape index: {}]   ;;  %s1380_s3 = inlined_call_operand.vmem [shape: f32[1,256], index: 3, kind: input, shape index: {}]   ;;  %s1381_s4 = inlined_call_operand.hbm [shape: f32[8,256], index: 4, kind: output, shape index: {}]  }
   0x1   :  { %10 = vsyncpa [#allocation6], 0 }
   0x2   :  { %12 = vsyncpa [#allocation6 + $0x1], 0 }
   0x3   :  { %13 = vsyncpa [#allocation4], 0 }
   0x4   :  { %15 = vsyncpa [#allocation4 + $0x1], 0  ;;  %s1123_s15 = smov 0   ;;  %s1125_s16 = smov 0  }
   0x5   :  { %s1127_s17 = smov 0   ;;  %s1129_s18 = smov 0  }
   0x6   :  { %s1131_s19 = smov 0   ;;  %s1133_s20 = smov 0  }
   0x7 LB: > { %s744_s21 = sadd.s32 4294967295, %s1088_s20   ;;  %s745_s22 = sadd.s32 4294967294, %s1088_s20   ;;  %s1088_s20 = sphi %s1133_s20, %s21_s20   ;;  %s1084_s19 = sphi %s1131_s19, %s1409_s19   ;;  %s1080_s18 = sphi %s1129_s18, %s1408_s18   ;;  %s1076_s17 = sphi %s1127_s17, %s1407_s17   ;;  %s1072_s16 = sphi %s1125_s16, %s1406_s16   ;;  %s1068_s15 = sphi %s1123_s15, %s1405_s15  }
   0x8   : > { %s63_s23 = sadd.s32 1, %s1076_s17  ;;  %p70_p0 = scmp.ne.s32.totalorder %s1076_s17, %s1072_s16 }
   0x9   : > { %p71_p1 = scmp.eq.s32.totalorder %s1088_s20, 0  ;;  %p76_p2 = scmp.ne.s32.totalorder %s1072_s16, %s1068_s15 }
   0xa   : > { %p1161_p3 = scmp.eq.s32.totalorder %s744_s21, 0  ;;  %p152_p4 = scmp.eq.s32.totalorder %s744_s21, 1 }
   0xb   : > { %p1165_p5 = por %p71_p1, %p70_p0  ;;  %p158_p6 = scmp.eq.s32.totalorder %s745_s22, 1 }
   0xc   : > { %s1388_s24 = scalar_select %p1161_p3, 1, 0 }
   0xd   : > { %p1171_p7 = por %p1161_p3, %p76_p2  ;;  %p1175_p8 = por %p152_p4, %p70_p0 }
   0xe   : > { %p1179_p9 = por %p158_p6, %p76_p2  ;;  %p746_p10 = scmp.ge.s32.totalorder %s1088_s20, 1 }
   0xf   : > { %s1390_s26 = scalar_select %p1171_p7, 1, 0 }
  0x10   : > { %s1391_s27 = scalar_select %p1175_p8, 1, 0 }
  0x11   : > { %s1392_s28 = scalar_select %p1179_p9, 1, 0 }
  0x12   : > { %p165_p11 = scmp.lt.s32.totalorder %s1088_s20, 3  ;;  %s1090_s30 = smov [#allocation2]  }
  0x13   : > { %s178_s5 = sshll.u32 %s1090_s30, 4  ;;  %p858_p1 = scmp.lt.s32.totalorder %s1088_s20, 2  ;;  %s179_s5 = int_to_ptr.vmem [resolvable:$true] %s178_s5 }
  0x14   : > { %p1186_p13 = pnand %p746_p10, %p165_p11  ;;  %s33_s8 = sadd.s32 1, %s1084_s19 }
  0x15   : > { %p1195_p4 = pnand %p858_p1, %p1165_p5  ;;  %p1206_p6 = scmp.ge.s32.totalorder %s33_s8, 2 }
  0x16   : > { %s1393_s29 = scalar_select %p1186_p13, 1, 0 }
  0x17   : > { %p845_p0 = pneg %p1186_p13  ;;  %s189_s10 = sand.u32 1, %s1076_s17  }
  0x18   : > { %s1394_s6 = scalar_select %p1195_p4, 1, 0 }
  0x19   : > { %p1201_p2 = pnand %p845_p0, %p1161_p3  ;;  %s944_s13 = scalar_lea.hbm %s1377_s0, 192 }
  0x1a   : > { %s1396_s9 = scalar_select %p1206_p6, 1, 0 }
  0x1b   : > { %p945_p5 = scmp.ne.s32.totalorder %s1377_s0, %s944_s13  ;;  %p946_p10 = pneg %p1201_p2 }
  0x1c   : > { %p951_p0 = scmp.lt.u32.totalorder %s944_s13, %s1377_s0 }
  0x1d   : > { %p947_p11 = pnand %p946_p10, %p945_p5 }
  0x1f   : > { %p948_p1 = pneg %p947_p11 }
  0x21   : > { %p953_p12 = pnand %p951_p0, %p948_p1 }
  0x23   : > { %956 = shalt.err (!%p953_p12)
}
  0x24   : > { %s957_s30 = scalar_lea.vmem %s179_s5, 192  ;;  %p965_p3 = scmp.lt.s32.totalorder %s179_s5, %s179_s5 }
  0x25   : > { %p958_p9 = scmp.ne.s32.totalorder %s179_s5, %s957_s30  ;;  %p966_p13 = scmp.lt.s32.totalorder %s957_s30, %s957_s30 }
  0x27   : > { %p960_p8 = pnand %p958_p9, %p946_p10  ;;  %p967_p4 = por %p966_p13, %p965_p3 }
  0x29   : > { %p961_p7 = pneg %p960_p8 }
  0x2b   : > { %p968_p6 = pnand %p967_p4, %p961_p7 }
  0x2d   : > { %971 = shalt.err (!%p968_p6)
}
  0x2e   : > { %848 = dma.hbm_to_vmem [thread:$0]  (!%p1201_p2), %s1377_s0, 192, %s179_s5, [#allocation3]  }
  0x2f   : > { %p1397_p9 = scmp.ne.s32.totalorder %s1396_s9, 0  ;;  %s835_s13 = smul.u32 192, %s189_s10 }
  0x30   : > { %s749_s21 = sshll.u32 %s1084_s19, 6  ;;  %s1246_s9 = scalar_lea.sflag [#allocation6], %s189_s10 }
  0x31   : > { %s1411_s8 = smov (%p1397_p9, %s33_s8), 0  ;;  %s1237_s25 = scalar_lea.hbm %s1378_s1, %s749_s21 }
  0x32   : > { %s59_s14 = ssub.s32 %s1084_s19, %s1411_s8  ;;  %s193_s30 = scalar_lea.vmem [#allocation5], %s835_s13 }
  0x33   : > { %p61_p3 = scmp.eq.s32.totalorder %s59_s14, 0  ;;  %s202_s11 = sshll.u32 %s193_s30, 4  ;;  %s1244_s11 = int_to_ptr.vmem [resolvable:$true] %s202_s11 }
  0x34   : > { %s972_s12 = scalar_lea.hbm %s1237_s25, 3072  ;;  %p1398_p8 = scmp.ne.s32.totalorder %s1394_s6, 0 }
  0x35   : > { %s1242_s5 = scalar_select %p61_p3, %s1076_s17, %s63_s23  }
  0x36   : > { %p973_p7 = scmp.ne.s32.totalorder %s1237_s25, %s972_s12  ;;  %p974_p12 = pneg %p1398_p8 }
  0x37   : > { %s977_s13 = scalar_lea.hbm %s1378_s1, 6144  ;;  %p978_p2 = scmp.lt.u32.totalorder %s1237_s25, %s1378_s1 }
  0x38   : > { %p975_p13 = pnand %p974_p12, %p973_p7  ;;  %p979_p6 = scmp.lt.u32.totalorder %s977_s13, %s972_s12 }
  0x39   : > { %p981_p10 = scmp.lt.u32.totalorder %s972_s12, %s1237_s25 }
  0x3a   : > { %p976_p4 = pneg %p975_p13  ;;  %p980_p5 = por %p979_p6, %p978_p2 }
  0x3c   : > { %p982_p11 = por %p981_p10, %p980_p5 }
  0x3e   : > { %p983_p1 = pnand %p982_p11, %p976_p4 }
  0x40   : > { %986 = shalt.err (!%p983_p1)
}
  0x41   : > { %s987_s23 = scalar_lea.vmem %s1244_s11, 3072  ;;  %s1091_s10 = smov [#allocation5]  }
  0x42   : > { %p988_p0 = scmp.ne.s32.totalorder %s1244_s11, %s987_s23  ;;  %s992_s30 = sshll.u32 %s1091_s10, 4  ;;  %s993_s30 = int_to_ptr.vmem [resolvable:$false] %s992_s30 }
  0x43   : > { %s994_s14 = scalar_lea.vmem %s993_s30, 6144  ;;  %p995_p7 = scmp.lt.s32.totalorder %s1244_s11, %s993_s30 }
  0x44   : > { %p990_p9 = pnand %p988_p0, %p974_p12  ;;  %p996_p13 = scmp.lt.s32.totalorder %s994_s14, %s987_s23 }
  0x46   : > { %p991_p3 = pneg %p990_p9  ;;  %p997_p2 = por %p996_p13, %p995_p7 }
  0x48   : > { %p998_p6 = pnand %p997_p2, %p991_p3 }
  0x4a   : > { %1001 = shalt.err (!%p998_p6)
}
  0x4b   : > { %s1092_s12 = smov 128   ;;  %s1093_s21 = smov 64  }
  0x4c   : > { %s1094_s13 = smov 4   ;;  %p1399_p12 = scmp.ne.s32.totalorder %s1393_s29, 0 }
  0x4d   : > { %852 = dma.hbm_to_vmem [thread:$0]  (!%p1398_p8), %s1237_s25, 3072, %s1244_s11, %s1246_s9, %s1092_s12, %s1093_s21, %s1094_s13  }
  0x4e   : > { %226 = sbr.rel (%p1399_p12) target bundleno = 415 (0x19f), region = 36  ;;  %p1400_p4 = scmp.ne.s32.totalorder (!%p1399_p12), %s1388_s24, 0 }
  0x55   : > { %1055 = dma.done.wait (%p1400_p4), [#allocation3], 192  }
  0x56   : > { %1057 = vsyncadd (%p1400_p4), [#allocation3], 4294967104  ;;  %s1281_s7 = sand.u32 1, %s1072_s16   ;;  %p1401_p8 = scmp.ne.s32.totalorder %s1390_s26, 0 }
  0x57   : > { %s836_s22 = smul.u32 192, %s1281_s7  ;;  %s233_s23 = scalar_lea.sflag [#allocation6], %s1281_s7 }
  0x59   : > { %s1285_s10 = scalar_lea.vmem [#allocation5], %s836_s22 }
  0x5a   : > { %1059 = dma.done.wait (%p1401_p8), %s233_s23, 3072  }
  0x5b   : > { %1061 = vsyncadd (%p1401_p8), %s233_s23, 4294964224  ;;  %v1095_v0 = vmov 0.0   ;;  %vm1096_vm0 = vmmov 0   ;;  %v915_v1 = vld [vmem:[%s1285_s10 + $0x40] sm:$0xff]   ;;  %v918_v4 = vld [vmem:[%s1285_s10 + $0x48] sm:$0xff]   ;;  %p268_p5 = scmp.lt.s32.totalorder %s1080_s18, 1  ;;  %v602_v56 = vlaneseq }
  0x5c   : > { %815 = vmatprep.subr.bf16.mxu1 %v1095_v0  ;;  %831 = vmatprep.mubr.msk.bf16.mxu1 %vm1096_vm0, %v1095_v0  ;;  %v916_v2 = vld [vmem:[%s1285_s10] sm:$0xff]   ;;  %v919_v5 = vld [vmem:[%s1285_s10 + $0x8] sm:$0xff]   ;;  %v921_v7 = vld [vmem:[%s1285_s10 + $0x50] sm:$0xff]   ;;  %s752_s30 = sshll.u32 %s1281_s7, 3  ;;  %s781_s14 = sshll.u32 %s1080_s18, 7 }
  0x5d   : > { %784 = vmatprep.subr.bf16.mxu0 %v915_v1  ;;  %v917_v3 = vld [vmem:[%s1285_s10 + $0x80] sm:$0xff]   ;;  %v920_v6 = vld [vmem:[%s1285_s10 + $0x88] sm:$0xff]   ;;  %v922_v8 = vld [vmem:[%s1285_s10 + $0x10] sm:$0xff]   ;;  %s269_s24 = scalar_select %p268_p5, %s1080_s18, 1  ;;  %v603_v57 = vshrl.u32 %v602_v56, 7 }
  0x5e   : > { %785 = vmatpush3.bf16.msra.mxu0 %v916_v2  ;;  %816 = vmatpush3.bf16.msra.mxu1 %v917_v3  ;;  %v923_v9 = vld [vmem:[%s1285_s10 + $0x90] sm:$0xff]   ;;  %v924_v10 = vld [vmem:[%s1285_s10 + $0x58] sm:$0xff]   ;;  %v927_v13 = vld [vmem:[%s1285_s10 + $0x60] sm:$0xff]   ;;  %s266_s12 = scalar_lea.vmem [#allocation7], %s752_s30  ;;  %s1328_s23 = scalar_lea.hbm %s1381_s4, %s781_s14 }
  0x5f   : > { %786 = vmatprep.subr.bf16.mxu0 %v918_v4  ;;  %817 = vmatprep.subr.bf16.mxu1 %v1095_v0  ;;  %v925_v11 = vld [vmem:[%s1285_s10 + $0x18] sm:$0xff]   ;;  %v928_v14 = vld [vmem:[%s1285_s10 + $0x20] sm:$0xff]   ;;  %v930_v16 = vld [vmem:[%s1285_s10 + $0x68] sm:$0xff]   ;;  %s270_s6 = scalar_lea.vmem %s1379_s2, %s269_s24  ;;  %s273_s9 = scalar_lea.vmem %s1380_s3, %s269_s24  ;;  %v604_v59 = vsub.s32 0, %v603_v57 }
  0x60   : > { %v926_v12 = vld [vmem:[%s1285_s10 + $0x98] sm:$0xff]   ;;  %v929_v15 = vld [vmem:[%s1285_s10 + $0xa0] sm:$0xff]   ;;  %v931_v17 = vld [vmem:[%s1285_s10 + $0x28] sm:$0xff]   ;;  %s632_s21 = sshll.u32 %s266_s12, 4  ;;  %p1402_p11 = scmp.ne.s32.totalorder %s1391_s27, 0  ;;  %s1330_s21 = int_to_ptr.vmem [resolvable:$true] %s632_s21 }
  0x61   : > { %v932_v18 = vld [vmem:[%s1285_s10 + $0xa8] sm:$0xff]   ;;  %v933_v19 = vld [vmem:[%s1285_s10 + $0x70] sm:$0xff]   ;;  %v936_v22 = vld [vmem:[%s1285_s10 + $0x78] sm:$0xff]   ;;  %s1002_s24 = scalar_lea.vmem %s1330_s21, 128  ;;  %s1097_s18 = smov [#allocation7]  }
  0x62   : > { %787 = vmatpush3.bf16.msra.mxu0 %v919_v5  ;;  %818 = vmatpush3.bf16.msra.mxu1 %v920_v6  ;;  %v934_v20 = vld [vmem:[%s1285_s10 + $0x30] sm:$0xff]   ;;  %v937_v25 = vld [vmem:[%s1285_s10 + $0x38] sm:$0xff]   ;;  %p1003_p10 = scmp.ne.s32.totalorder %s1330_s21, %s1002_s24  ;;  %s1006_s26 = sshll.u32 %s1097_s18, 4  ;;  %s1007_s26 = int_to_ptr.vmem [resolvable:$false] %s1006_s26 }
  0x63   : > { %788 = vmatprep.subr.bf16.mxu0 %v921_v7  ;;  %819 = vmatprep.subr.bf16.mxu1 %v1095_v0  ;;  %v935_v21 = vld [vmem:[%s1285_s10 + $0xb0] sm:$0xff]   ;;  %v938_v26 = vld [vmem:[%s1285_s10 + $0xb8] sm:$0xff]   ;;  %s619_s10 = scalar_lea.sflag [#allocation4], %s1281_s7  ;;  %s1008_s29 = scalar_lea.vmem %s1007_s26, 256 }
  0x64   : > { %v285_v23 = vld [vmem:[#allocation2] sm:$0xff]  ;;  %v941_v28 = vld [vmem:[#allocation2 + $0x8] ss:$0 sps:$4 sm:$0xff]   ;;  %p1004_p1 = pnand %p1003_p10, %p1402_p11  ;;  %p1009_p9 = scmp.lt.s32.totalorder %s1330_s21, %s1007_s26 }
  0x65   : > { %v754_v24 = vcombine.high %v285_v23, %v285_v23  ;;  %v753_v27 = vcombine.low %v285_v23, %v285_v23  ;;  %v594_v58 = vld [vmem:[%s270_s6] sm:$0x1]  ;;  %p1010_p3 = scmp.lt.s32.totalorder %s1008_s29, %s1002_s24 }
  0x66   : > { %789 = vmatpush3.bf16.msra.mxu0 %v922_v8  ;;  %820 = vmatpush3.bf16.msra.mxu1 %v923_v9  ;;  %v598_v62 = vld [vmem:[%s273_s9] sm:$0x1]  ;;  %p1005_p0 = pneg %p1004_p1 }
  0x67   : > { %790 = vmatprep.subr.bf16.mxu0 %v924_v10  ;;  %821 = vmatprep.subr.bf16.mxu1 %v1095_v0  ;;  %p1011_p7 = por %p1010_p3, %p1009_p9 }
  0x68   : > { %523 = vmatprep.mubr.bf16.mxu0 %v754_v24 }
  0x69   : > { %p1012_p13 = pnand %p1011_p7, %p1005_p0 }
  0x6a   : > { %791 = vmatpush3.bf16.msra.mxu0 %v925_v11  ;;  %822 = vmatpush3.bf16.msra.mxu1 %v926_v12 }
  0x6b   : > { %792 = vmatprep.subr.bf16.mxu0 %v927_v13  ;;  %823 = vmatprep.subr.bf16.mxu1 %v1095_v0 }
  0x6e   : > { %793 = vmatpush3.bf16.msra.mxu0 %v928_v14  ;;  %824 = vmatpush3.bf16.msra.mxu1 %v929_v15 }
  0x6f   : > { %794 = vmatprep.subr.bf16.mxu0 %v930_v16  ;;  %825 = vmatprep.subr.bf16.mxu1 %v1095_v0 }
  0x72   : > { %795 = vmatpush3.bf16.msra.mxu0 %v931_v17  ;;  %826 = vmatpush3.bf16.msra.mxu1 %v932_v18 }
  0x73   : > { %796 = vmatprep.subr.bf16.mxu0 %v933_v19  ;;  %827 = vmatprep.subr.bf16.mxu1 %v1095_v0 }
  0x76   : > { %797 = vmatpush3.bf16.msra.mxu0 %v934_v20  ;;  %828 = vmatpush3.bf16.msra.mxu1 %v935_v21 }
  0x77   : > { %798 = vmatprep.subr.bf16.mxu0 %v936_v22  ;;  %829 = vmatprep.subr.bf16.mxu1 %v1095_v0 }
  0x7a   : > { %799 = vmatpush3.bf16.msra.mxu0 %v937_v25  ;;  %830 = vmatpush3.bf16.msra.mxu1 %v938_v26 }
  0x7d   : > { %524 = vmatmul.mubr.bf16.vlgmr.msra.gmra.mrb[0].mxu0 %v753_v27  ;;  %832 = vmatmul.mubr.bf16.vlgmr.msra.gmra.mrb[0].mxu1 %v941_v28 }
 0x150   : > { %v800_v29 = vpop.f32.mrb[0].mxu0  ;;  %v565_v30 = vpop.f32.mrb[0].mxu1 }
 0x151   : > { %v801_v31 = vpop.f32.mrb[1].mxu0  ;;  %v833_v33 = vpop.f32.mrb[1].mxu1 }
 0x152   : > { %v802_v32 = vadd.f32 %v801_v31, %v800_v29  ;;  %v803_v34 = vpop.f32.mrb[2].mxu0  ;;  %v568_v35 = vpop.f32.mrb[2].mxu1 }
 0x153   : > { %v804_v36 = vpop.f32.mrb[3].mxu0  ;;  %v834_v38 = vpop.f32.mrb[3].mxu1 }
 0x154   : > { %v566_v37 = vadd.f32 %v802_v32, %v565_v30 }
 0x156   : > { %v577_v39 = vrot.slane %v566_v37, 4 }
 0x158   : > { %v578_v40 = vadd.f32 %v577_v39, %v566_v37 }
 0x15a   : > { %v579_v41 = vrot.slane %v578_v40, 2 }
 0x15c   : > { %v580_v42 = vadd.f32 %v579_v41, %v578_v40 }
 0x15e   : > { %v581_v43 = vrot.slane %v580_v42, 1 }
 0x160   : > { %v582_v44 = vadd.f32 %v581_v43, %v580_v42 }
 0x162   : > { %v584_v45 = vmul.f32 0.125, %v582_v44 }
 0x164   : > { %v585_v46 = vsub.f32 %v566_v37, %v584_v45 }
 0x166   : > { %v586_v47 = vmul.f32 %v585_v46, %v585_v46 }
 0x168   : > { %v587_v48 = vrot.slane %v586_v47, 4 }
 0x16a   : > { %v588_v49 = vadd.f32 %v587_v48, %v586_v47 }
 0x16c   : > { %v589_v50 = vrot.slane %v588_v49, 2 }
 0x16e   : > { %v590_v51 = vadd.f32 %v589_v50, %v588_v49 }
 0x170   : > { %v591_v52 = vrot.slane %v590_v51, 1 }
 0x172   : > { %v592_v53 = vadd.f32 %v591_v52, %v590_v51 }
 0x174   : > { %v593_v54 = vmul.f32 0.125, %v592_v53 }
 0x176   : > { %v595_v55 = vadd.f32 1e-05, %v593_v54 }
 0x178   : > { %942 = vrsqrt.f32 %v595_v55 }
 0x182   : > { %v943_v60 = vpop.eup %942 }
 0x183   : > { %v597_v61 = vmul.f32 %v943_v60, %v594_v58 }
 0x185   : > { %v599_v63 = vmul.f32 %v597_v61, %v584_v45  ;;  %v605_v0 = vrot.slane %v597_v61, %v604_v59 }
 0x187   : > { %v600_v1 = vsub.f32 %v598_v62, %v599_v63  ;;  %v607_v2 = vmul.f32 %v605_v0, %v566_v37 }
 0x189   : > { %v612_v3 = vrot.slane %v600_v1, %v604_v59 }
 0x18b   : > { %v614_v4 = vadd.f32 %v612_v3, %v607_v2 }
 0x18d   : > { %v615_v5 = vmul.f32 0.01, %v614_v4 }
 0x18f   : > { %v616_v6 = vmax.f32 %v614_v4, %v615_v5 }
 0x191   : > { %617 = vst [vmem:[%s266_s12] sm:$0xff] %v616_v6 }
 0x192   : > { %1015 = shalt.err (!%p1012_p13)
}
 0x193   : > { %s1016_s7 = scalar_lea.hbm %s1328_s23, 128  ;;  %s1020_s11 = scalar_lea.hbm %s1381_s4, 256 }
 0x194   : > { %p1017_p2 = scmp.ne.s32.totalorder %s1328_s23, %s1016_s7  ;;  %p1021_p4 = scmp.lt.u32.totalorder %s1328_s23, %s1381_s4 }
 0x195   : > { %p1022_p8 = scmp.lt.u32.totalorder %s1020_s11, %s1016_s7  ;;  %p1024_p10 = scmp.lt.u32.totalorder %s1016_s7, %s1328_s23 }
 0x196   : > { %p1018_p6 = pnand %p1017_p2, %p1402_p11 }
 0x197   : > { %p1023_p5 = por %p1022_p8, %p1021_p4 }
 0x198   : > { %p1019_p12 = pneg %p1018_p6 }
 0x199   : > { %p1025_p1 = por %p1024_p10, %p1023_p5 }
 0x19b   : > { %p1026_p0 = pnand %p1025_p1, %p1019_p12 }
 0x19d   : > { %1029 = shalt.err (!%p1026_p0)
}
 0x19e   : > { %843 = dma.vmem_to_hbm [thread:$0]  (%p1402_p11), %s1330_s21, 128, %s1328_s23, %s619_s10  }
 0x19f PF: > { %s644_s14 = sand.u32 1, %s1068_s15   ;;  %p1403_p9 = scmp.ne.s32.totalorder %s1392_s28, 0 }
 0x1a0   : > { %p1404_p3 = scmp.ge.s32.totalorder %s1088_s20, 2  ;;  %s645_s12 = scalar_lea.sflag [#allocation4], %s644_s14 }
 0x1a2   : > { %p854_p7 = pnand %p1404_p3, %p1403_p9 }
 0x1a4   : > { %1063 = dma.done.wait (!%p854_p7), %s645_s12, 128  }
 0x1a5   : > { %1065 = vsyncadd (!%p854_p7), %s645_s12, 4294967168  ;;  %s21_s20 = sadd.s32 1, %s1088_s20   ;;  %s1405_s15 = smov %s1072_s16 }
 0x1a6   : > { %p18_p13 = scmp.ge.s32.totalorder %s21_s20, 4   ;;  %s1406_s16 = smov %s1076_s17 }
 0x1a7   : > { %s1407_s17 = smov %s1242_s5  ;;  %s1408_s18 = smov %s1084_s19 }
 0x1a8   : > { %s1409_s19 = smov %s1411_s8  ;;  %20 = sbr.rel (!%p18_p13) target bundleno = 7 (0x7), region = 101 }
 0x1af   :  { %650 = vsyncpa [#allocation3], 1 }
 0x1b0   :  { %652 = vsyncpa [#allocation3 + $0x1], 1 }
 0x1b1   :  { %653 = vsyncpa [#allocation6], 1 }
 0x1b2   :  { %655 = vsyncpa [#allocation6 + $0x1], 1 }
 0x1b3   :  { %656 = vsyncpa [#allocation4], 1 }
 0x1b4   :  { %658 = vsyncpa [#allocation4 + $0x1], 1 }

</bundles_post_ra>
